<compile_context>
chip_gen: v5e
topology: v5e:2x2
jax: 0.10.0
libtpu: 0.0.40
codegen_flags: <defaults>
</compile_context>

<pallas_src>
import functools
from typing import Dict, NamedTuple, Tuple

import jax
import jax.numpy as jnp
from jax.experimental import pallas as pl
from jax.experimental.pallas import tpu as pltpu


class NestedTensor(NamedTuple):
    tensors: jnp.ndarray  # [N, C, H, W]
    mask: jnp.ndarray     # [N, H, W] bool


def _round_up(x: int, m: int) -> int:
    return ((x + m - 1) // m) * m


def _cdiv(a: int, b: int) -> int:
    return -(-a // b)


def _vmem_limit_bytes() -> int:
    """Chip-gated VMEM budget: ~60% of physical (v5e/v6e 128 MiB, v7x 64 MiB)."""
    try:
        cap = int(pltpu.get_tpu_info().vmem_capacity_bytes)
    except Exception:
        cap = 64 * 1024 * 1024  # assume the smallest (v7x) if detection fails
    return max(min(cap * 6 // 10, 96 * 1024 * 1024), 32 * 1024 * 1024)


# ----------------------------------------------------------------------------
# Pallas kernel: fused KexKe stride-1 conv + bias + ReLU on a flattened image
# ----------------------------------------------------------------------------
def _conv_taps_kernel(x_ref, w_ref, b_ref, o_ref, *, ke, we, ho, wo, mk):
    """x_ref: [1, Mx, Ce] bf16  (row-major flattened padded image, Mx >= (ke-1)*(we+1)+mk)
       w_ref: [Ke*Ke, Ce, tn] bf16   b_ref: [1, tn] f32   o_ref: [1, Ho, Wo, tn] bf16."""
    tn = w_ref.shape[2]
    acc = jnp.zeros((mk, tn), jnp.float32)
    # Tap-by-tap accumulation: the im2col expansion never exists in HBM.  Each tap's LHS
    # is a contiguous row window of the flattened image (junk columns at row boundaries
    # are computed and discarded below).
    for t in range(ke * ke):
        off = (t // ke) * we + (t % ke)
        lhs = x_ref[0, off:off + mk, :]
        acc = acc + jnp.dot(lhs, w_ref[t], preferred_element_type=jnp.float32)
    # Bias + ReLU once, on the f32 accumulator; emit bf16 (half-width stores).
    act = jnp.maximum(acc + b_ref[...], 0.0).astype(o_ref.dtype)
    # De-junk: valid output (r, c) lives at flattened row r*We + c (c < Wo).
    for r in range(ho):
        o_ref[0, r, :, :] = act[r * we:r * we + wo, :]
    # TODO(synk): for large spatial sizes add an output-row grid axis (halo-aware blocks)
    # instead of one whole image per grid step.


def _conv_pallas(xflat, w_eff, b, *, ke, we, ho, wo, mk, conv_flops, hbm_bytes):
    n, mx, ce = xflat.shape
    cout = w_eff.shape[-1]
    # Cout tiling: natural width for small Cout (no 128-lane padding of tiny channel
    # counts -> no 4-16x wasted FLOPs/DMA); 256-aligned tiles for large Cout (fills the
    # 2x256^2 MXUs on v6e/v7x).
    if cout <= 256:
        tn = cout
    elif cout % 256 == 0:
        tn = 256
    elif cout % 128 == 0:
        tn = 128
    else:
        tn = cout
    grid = (n, pl.cdiv(cout, tn))

    kernel = functools.partial(_conv_taps_kernel, ke=ke, we=we, ho=ho, wo=wo, mk=mk)
    return pl.pallas_call(
        kernel,
        out_shape=jax.ShapeDtypeStruct((n, ho, wo, cout), jnp.bfloat16),
        grid_spec=pltpu.PrefetchScalarGridSpec(
            num_scalar_prefetch=0,
            grid=grid,  # (batch, Cout tiles): both independent -> megacore-shardable
            in_specs=[
                pl.BlockSpec((1, mx, ce), lambda i, j: (i, 0, 0)),
                pl.BlockSpec((ke * ke, ce, tn), lambda i, j: (0, 0, j)),
                pl.BlockSpec((1, tn), lambda i, j: (0, j)),
            ],
            out_specs=pl.BlockSpec((1, ho, wo, tn), lambda i, j: (i, 0, 0, j)),
        ),
        compiler_params=pltpu.CompilerParams(
            dimension_semantics=("parallel", "parallel"),
            vmem_limit_bytes=_vmem_limit_bytes(),
        ),
        cost_estimate=pl.CostEstimate(
            flops=conv_flops, transcendentals=0, bytes_accessed=hbm_bytes),
    )(xflat, w_eff, b)


# ----------------------------------------------------------------------------
# Layer wrapper: 3x3 conv (pad=1, stride 1 or 2) + bias + ReLU, NHWC in/out
# ----------------------------------------------------------------------------
def _conv3x3_bias_relu(x, w, b, stride):
    """x: [N,H,W,Cin] bf16, w: [3,3,Cin,Cout] f32, b: [1,Cout] f32 -> [N,Ho,Wo,Cout] bf16."""
    n, h, wd, cin = x.shape
    cout = w.shape[-1]
    ho = (h - 1) // stride + 1
    wo = (wd - 1) // stride + 1

    if stride == 1:
        ke, ce = 3, cin
        we = wd + 2
        he0 = h + 2
        mk = _round_up((ho - 1) * we + wo, 8)
        need = (ke - 1) * (we + 1) + mk
        extra = _cdiv(max(0, need - he0 * we), we)
        he = he0 + extra
        # Single pad op: the 1-pixel border plus the few extra bottom rows the flattened
        # kernel formulation needs (folded into the same pad -> no separate pad pass).
        xe = jnp.pad(x, ((0, 0), (1, 1 + extra), (1, 1), (0, 0)))
        w_eff = w.reshape(9, cin, cout)
    else:  # stride == 2: space-to-depth -> stride-1 2x2 conv with 4*Cin channels
        ke, ce = 2, 4 * cin
        hp = _round_up(h + 2, 2)
        wp = _round_up(wd + 2, 2)
        we = wp // 2
        he0 = hp // 2
        mk = _round_up((ho - 1) * we + wo, 8)
        need = (ke - 1) * (we + 1) + mk
        extra = _cdiv(max(0, need - he0 * we), we)
        he = he0 + extra
        xp = jnp.pad(x, ((0, 0), (1, hp - h - 1 + 2 * extra), (1, wp - wd - 1), (0, 0)))
        xe = (xp.reshape(n, he, 2, we, 2, cin)
                .transpose(0, 1, 3, 2, 4, 5)
                .reshape(n, he, we, ce))
        # Rearranged weight: W2[ay,ax,(py,px,ci),co] = w[2ay+py, 2ax+px, ci, co] (0 beyond 3x3)
        wpad = jnp.pad(w, ((0, 1), (0, 1), (0, 0), (0, 0)))
        w_eff = (wpad.reshape(2, 2, 2, 2, cin, cout)
                 .transpose(0, 2, 1, 3, 4, 5)
                 .reshape(4, ce, cout))

    xflat = xe.reshape(n, he * we, ce)  # free reshape (contiguous)
    conv_flops = 2 * n * ho * wo * 9 * cin * cout  # real (unpadded) conv flops
    hbm_bytes = (xflat.size * 2 + w_eff.size * 2 + b.size * 4 + n * ho * wo * cout * 2)
    return _conv_pallas(xflat, w_eff.astype(jnp.bfloat16), b,
                        ke=ke, we=we, ho=ho, wo=wo, mk=mk,
                        conv_flops=int(conv_flops), hbm_bytes=int(hbm_bytes))


def _interp_nearest_mask(mask: jnp.ndarray, size: Tuple[int, int]) -> jnp.ndarray:
    """Mirror of F.interpolate(m[None].float(), size=size).to(bool)[0] (mode='nearest')."""
    N, H, W = mask.shape
    h, w = size
    rows = (jnp.arange(h) * H) // h
    cols = (jnp.arange(w) * W) // w
    return mask[:, rows][:, :, cols]


# ----------------------------------------------------------------------------
# BackboneBase equivalent
# ----------------------------------------------------------------------------
def init_backbone_params(key, in_channels: int = 4):
    """Deterministic synthetic parameters for stem + layer1..layer4 (3x3 convs)."""
    cfg = [
        ("stem", in_channels, 8, 2),
        ("layer1", 8, 16, 1),
        ("layer2", 16, 32, 2),
        ("layer3", 32, 64, 2),
        ("layer4", 64, 128, 2),
    ]
    params = {}
    for name, cin, cout, stride in cfg:
        key, kw, kb = jax.random.split(key, 3)
        scale = 1.0 / jnp.sqrt(9.0 * cin)
        w = jax.random.normal(kw, (3, 3, cin, cout), dtype=jnp.float32) * scale
        b = jax.random.normal(kb, (1, cout), dtype=jnp.float32) * 0.01
        params[name] = {"w": w, "b": b, "stride": stride}
    return params


def backbone_base_forward(params, tensor_list: NestedTensor,
                          return_interm_layers: bool = True) -> Dict[str, NestedTensor]:
    # NCHW (PyTorch convention) -> NHWC; bf16 activations end-to-end between layers.
    x = jnp.transpose(tensor_list.tensors, (0, 2, 3, 1)).astype(jnp.bfloat16)
    m = tensor_list.mask
    assert m is not None

    if return_interm_layers:
        return_layers = {"layer1": "0", "layer2": "1", "layer3": "2", "layer4": "3"}
    else:
        return_layers = {"layer4": "0"}

    # IntermediateLayerGetter: run modules in registration order, collect requested ones.
    xs: Dict[str, jnp.ndarray] = {}
    for name in ["stem", "layer1", "layer2", "layer3", "layer4"]:
        p = params[name]
        x = _conv3x3_bias_relu(x, p["w"], p["b"], p["stride"])
        if name in return_layers:
            xs[return_layers[name]] = x

    # BackboneBase.forward: resize mask to each feature map's spatial size.
    out: Dict[str, NestedTensor] = {}
    for out_name, feat_nhwc in xs.items():
        h, w = feat_nhwc.shape[1], feat_nhwc.shape[2]
        mask = _interp_nearest_mask(m, (h, w))
        feat_nchw = jnp.transpose(feat_nhwc, (0, 3, 1, 2)).astype(jnp.float32)
        out[out_name] = NestedTensor(feat_nchw, mask)
    return out
    # TODO(synk): parameter requires_grad_ freezing is a training-time concept with no
    # forward-pass / kernel equivalent.


# ----------------------------------------------------------------------------
# Pure-JAX reference (same bf16 operand quantization) for correctness checking
# ----------------------------------------------------------------------------
def _reference_forward(params, tensor_list: NestedTensor,
                       return_interm_layers: bool = True) -> Dict[str, jnp.ndarray]:
    x = jnp.transpose(tensor_list.tensors, (0, 2, 3, 1)).astype(jnp.bfloat16)
    if return_interm_layers:
        return_layers = {"layer1": "0", "layer2": "1", "layer3": "2", "layer4": "3"}
    else:
        return_layers = {"layer4": "0"}
    feats = {}
    for name in ["stem", "layer1", "layer2", "layer3", "layer4"]:
        p = params[name]
        s = p["stride"]
        y = jax.lax.conv_general_dilated(
            x, p["w"].astype(jnp.bfloat16),
            window_strides=(s, s), padding=((1, 1), (1, 1)),
            dimension_numbers=("NHWC", "HWIO", "NHWC"),
            preferred_element_type=jnp.float32)
        y = jnp.maximum(y + p["b"].reshape(1, 1, 1, -1), 0.0)
        x = y.astype(jnp.bfloat16)
        if name in return_layers:
            feats[return_layers[name]] = jnp.transpose(x, (0, 3, 1, 2)).astype(jnp.float32)
    return feats


if __name__ == "__main__":
    key = jax.random.PRNGKey(0)
    k_params, k_x = jax.random.split(key)

    N, C, H, W = 2, 4, 16, 16
    x = jax.random.normal(k_x, (N, C, H, W), dtype=jnp.float32)
    # mask: pad the right/bottom quarter of each image.
    mask = jnp.zeros((N, H, W), dtype=bool)
    mask = mask.at[:, H * 3 // 4:, :].set(True)
    mask = mask.at[:, :, W * 3 // 4:].set(True)

    params = init_backbone_params(k_params, in_channels=C)
    tensor_list = NestedTensor(x, mask)

    out = backbone_base_forward(params, tensor_list, return_interm_layers=True)
    for name, nt in out.items():
        jax.block_until_ready(nt.tensors)
        jax.block_until_ready(nt.mask)

    # Sanity: expected spatial sizes, dtypes, finiteness, ReLU non-negativity.
    expected = {"0": (16, 8, 8), "1": (32, 4, 4), "2": (64, 2, 2), "3": (128, 1, 1)}
    for name, (c, h, w) in expected.items():
        assert out[name].tensors.shape == (N, c, h, w), out[name].tensors.shape
        assert out[name].tensors.dtype == jnp.float32
        assert out[name].mask.shape == (N, h, w)
        assert out[name].mask.dtype == jnp.bool_
        assert bool(jnp.all(jnp.isfinite(out[name].tensors)))
        assert bool(jnp.all(out[name].tensors >= 0.0))

    # Numerics vs a pure-JAX lax.conv reference using the same bf16 operands.
    ref = _reference_forward(params, tensor_list, return_interm_layers=True)
    for name in expected:
        a = out[name].tensors
        r = ref[name]
        ok = bool(jnp.allclose(a, r, atol=5e-2, rtol=5e-2))
        assert ok, (name, float(jnp.max(jnp.abs(a - r))))

    print("KERNEL_OK")
</pallas_src>

<mosaic_0001>
module attributes {stable_mosaic.version = 11 : i64} {
  func.func @_conv_taps_kernel(%arg0: i32, %arg1: i32, %arg2: memref<1x90x16xbf16, #tpu.memory_space<vmem>>, %arg3: memref<4x16x8xbf16, #tpu.memory_space<vmem>>, %arg4: memref<1x8xf32, #tpu.memory_space<vmem>>, %arg5: memref<1x8x8x8xbf16, #tpu.memory_space<vmem>>) attributes {dimension_semantics = [#tpu.dimension_semantics<parallel>, #tpu.dimension_semantics<parallel>], iteration_bounds = array<i64: 2, 1>, scalar_prefetch = 0 : i64, scratch_operands = 0 : i64, tpu.core_type = #tpu.core_type<tc>, window_params = [{transform_indices = @transform_0, window_bounds = array<i64: 1, 90, 16>}, {transform_indices = @transform_1, window_bounds = array<i64: 4, 16, 8>}, {transform_indices = @transform_2, window_bounds = array<i64: 1, 8>}, {transform_indices = @transform_3, window_bounds = array<i64: 1, 8, 8, 8>}]} {
    %cst = arith.constant 0.000000e+00 : f32
    %0 = vector.broadcast %cst : f32 to vector<72x8xf32>
    %c0 = arith.constant 0 : index
    %c0_0 = arith.constant 0 : index
    %c0_1 = arith.constant 0 : index
    %1 = vector.load %arg2[%c0, %c0_0, %c0_1] : memref<1x90x16xbf16, #tpu.memory_space<vmem>>, vector<1x72x16xbf16>
    %2 = vector.shape_cast %1 : vector<1x72x16xbf16> to vector<72x16xbf16>
    %c0_2 = arith.constant 0 : index
    %c0_3 = arith.constant 0 : index
    %c0_4 = arith.constant 0 : index
    %3 = vector.load %arg3[%c0_2, %c0_3, %c0_4] : memref<4x16x8xbf16, #tpu.memory_space<vmem>>, vector<1x16x8xbf16>
    %4 = vector.shape_cast %3 : vector<1x16x8xbf16> to vector<16x8xbf16>
    %cst_5 = arith.constant dense<0.000000e+00> : vector<72x8xf32>
    %5 = tpu.matmul %2, %4, %cst_5 {dimension_numbers = #tpu.dot_dimension_numbers<[1], [0], [0], [1], [0, 0, 1, 1], [], []>} : vector<72x16xbf16>, vector<16x8xbf16>, vector<72x8xf32> -> vector<72x8xf32>
    %6 = arith.addf %0, %5 : vector<72x8xf32>
    %c0_6 = arith.constant 0 : index
    %c1 = arith.constant 1 : index
    %c0_7 = arith.constant 0 : index
    %7 = vector.load %arg2[%c0_6, %c1, %c0_7] : memref<1x90x16xbf16, #tpu.memory_space<vmem>>, vector<1x72x16xbf16>
    %8 = vector.shape_cast %7 : vector<1x72x16xbf16> to vector<72x16xbf16>
    %c1_8 = arith.constant 1 : index
    %c0_9 = arith.constant 0 : index
    %c0_10 = arith.constant 0 : index
    %9 = vector.load %arg3[%c1_8, %c0_9, %c0_10] : memref<4x16x8xbf16, #tpu.memory_space<vmem>>, vector<1x16x8xbf16>
    %10 = vector.shape_cast %9 : vector<1x16x8xbf16> to vector<16x8xbf16>
    %cst_11 = arith.constant dense<0.000000e+00> : vector<72x8xf32>
    %11 = tpu.matmul %8, %10, %cst_11 {dimension_numbers = #tpu.dot_dimension_numbers<[1], [0], [0], [1], [0, 0, 1, 1], [], []>} : vector<72x16xbf16>, vector<16x8xbf16>, vector<72x8xf32> -> vector<72x8xf32>
    %12 = arith.addf %6, %11 : vector<72x8xf32>
    %c0_12 = arith.constant 0 : index
    %c9 = arith.constant 9 : index
    %c0_13 = arith.constant 0 : index
    %13 = vector.load %arg2[%c0_12, %c9, %c0_13] : memref<1x90x16xbf16, #tpu.memory_space<vmem>>, vector<1x72x16xbf16>
    %14 = vector.shape_cast %13 : vector<1x72x16xbf16> to vector<72x16xbf16>
    %c2 = arith.constant 2 : index
    %c0_14 = arith.constant 0 : index
    %c0_15 = arith.constant 0 : index
    %15 = vector.load %arg3[%c2, %c0_14, %c0_15] : memref<4x16x8xbf16, #tpu.memory_space<vmem>>, vector<1x16x8xbf16>
    %16 = vector.shape_cast %15 : vector<1x16x8xbf16> to vector<16x8xbf16>
    %cst_16 = arith.constant dense<0.000000e+00> : vector<72x8xf32>
    %17 = tpu.matmul %14, %16, %cst_16 {dimension_numbers = #tpu.dot_dimension_numbers<[1], [0], [0], [1], [0, 0, 1, 1], [], []>} : vector<72x16xbf16>, vector<16x8xbf16>, vector<72x8xf32> -> vector<72x8xf32>
    %18 = arith.addf %12, %17 : vector<72x8xf32>
    %c0_17 = arith.constant 0 : index
    %c10 = arith.constant 10 : index
    %c0_18 = arith.constant 0 : index
    %19 = vector.load %arg2[%c0_17, %c10, %c0_18] : memref<1x90x16xbf16, #tpu.memory_space<vmem>>, vector<1x72x16xbf16>
    %20 = vector.shape_cast %19 : vector<1x72x16xbf16> to vector<72x16xbf16>
    %c3 = arith.constant 3 : index
    %c0_19 = arith.constant 0 : index
    %c0_20 = arith.constant 0 : index
    %21 = vector.load %arg3[%c3, %c0_19, %c0_20] : memref<4x16x8xbf16, #tpu.memory_space<vmem>>, vector<1x16x8xbf16>
    %22 = vector.shape_cast %21 : vector<1x16x8xbf16> to vector<16x8xbf16>
    %cst_21 = arith.constant dense<0.000000e+00> : vector<72x8xf32>
    %23 = tpu.matmul %20, %22, %cst_21 {dimension_numbers = #tpu.dot_dimension_numbers<[1], [0], [0], [1], [0, 0, 1, 1], [], []>} : vector<72x16xbf16>, vector<16x8xbf16>, vector<72x8xf32> -> vector<72x8xf32>
    %24 = arith.addf %18, %23 : vector<72x8xf32>
    %c0_22 = arith.constant 0 : index
    %c0_23 = arith.constant 0 : index
    %25 = vector.load %arg4[%c0_22, %c0_23] : memref<1x8xf32, #tpu.memory_space<vmem>>, vector<1x8xf32>
    %26 = vector.broadcast %25 : vector<1x8xf32> to vector<72x8xf32>
    %27 = arith.addf %24, %26 : vector<72x8xf32>
    %cst_24 = arith.constant 0.000000e+00 : f32
    %28 = vector.broadcast %cst_24 : f32 to vector<72x8xf32>
    %29 = arith.maximumf %27, %28 : vector<72x8xf32>
    %30 = arith.truncf %29 : vector<72x8xf32> to vector<72x8xbf16>
    %31 = vector.extract_strided_slice %30 {offsets = [0, 0], sizes = [8, 8], strides = [1, 1]} : vector<72x8xbf16> to vector<8x8xbf16>
    %c0_25 = arith.constant 0 : index
    %c0_26 = arith.constant 0 : index
    %c0_27 = arith.constant 0 : index
    %c0_28 = arith.constant 0 : index
    %32 = vector.load %arg5[%c0_25, %c0_26, %c0_27, %c0_28] : memref<1x8x8x8xbf16, #tpu.memory_space<vmem>>, vector<1x1x8x8xbf16>
    %33 = vector.shape_cast %32 : vector<1x1x8x8xbf16> to vector<8x8xbf16>
    %34 = vector.shape_cast %31 : vector<8x8xbf16> to vector<1x1x8x8xbf16>
    tpu.vector_store %arg5[%c0_25, %c0_26, %c0_27, %c0_28], %34 {strides = array<i32>} : memref<1x8x8x8xbf16, #tpu.memory_space<vmem>>, vector<1x1x8x8xbf16>,
    %35 = vector.extract_strided_slice %30 {offsets = [9, 0], sizes = [8, 8], strides = [1, 1]} : vector<72x8xbf16> to vector<8x8xbf16>
    %c0_29 = arith.constant 0 : index
    %c1_30 = arith.constant 1 : index
    %c0_31 = arith.constant 0 : index
    %c0_32 = arith.constant 0 : index
    %36 = vector.load %arg5[%c0_29, %c1_30, %c0_31, %c0_32] : memref<1x8x8x8xbf16, #tpu.memory_space<vmem>>, vector<1x1x8x8xbf16>
    %37 = vector.shape_cast %36 : vector<1x1x8x8xbf16> to vector<8x8xbf16>
    %38 = vector.shape_cast %35 : vector<8x8xbf16> to vector<1x1x8x8xbf16>
    tpu.vector_store %arg5[%c0_29, %c1_30, %c0_31, %c0_32], %38 {strides = array<i32>} : memref<1x8x8x8xbf16, #tpu.memory_space<vmem>>, vector<1x1x8x8xbf16>,
    %39 = vector.extract_strided_slice %30 {offsets = [18, 0], sizes = [8, 8], strides = [1, 1]} : vector<72x8xbf16> to vector<8x8xbf16>
    %c0_33 = arith.constant 0 : index
    %c2_34 = arith.constant 2 : index
    %c0_35 = arith.constant 0 : index
    %c0_36 = arith.constant 0 : index
    %40 = vector.load %arg5[%c0_33, %c2_34, %c0_35, %c0_36] : memref<1x8x8x8xbf16, #tpu.memory_space<vmem>>, vector<1x1x8x8xbf16>
    %41 = vector.shape_cast %40 : vector<1x1x8x8xbf16> to vector<8x8xbf16>
    %42 = vector.shape_cast %39 : vector<8x8xbf16> to vector<1x1x8x8xbf16>
    tpu.vector_store %arg5[%c0_33, %c2_34, %c0_35, %c0_36], %42 {strides = array<i32>} : memref<1x8x8x8xbf16, #tpu.memory_space<vmem>>, vector<1x1x8x8xbf16>,
    %43 = vector.extract_strided_slice %30 {offsets = [27, 0], sizes = [8, 8], strides = [1, 1]} : vector<72x8xbf16> to vector<8x8xbf16>
    %c0_37 = arith.constant 0 : index
    %c3_38 = arith.constant 3 : index
    %c0_39 = arith.constant 0 : index
    %c0_40 = arith.constant 0 : index
    %44 = vector.load %arg5[%c0_37, %c3_38, %c0_39, %c0_40] : memref<1x8x8x8xbf16, #tpu.memory_space<vmem>>, vector<1x1x8x8xbf16>
    %45 = vector.shape_cast %44 : vector<1x1x8x8xbf16> to vector<8x8xbf16>
    %46 = vector.shape_cast %43 : vector<8x8xbf16> to vector<1x1x8x8xbf16>
    tpu.vector_store %arg5[%c0_37, %c3_38, %c0_39, %c0_40], %46 {strides = array<i32>} : memref<1x8x8x8xbf16, #tpu.memory_space<vmem>>, vector<1x1x8x8xbf16>,
    %47 = vector.extract_strided_slice %30 {offsets = [36, 0], sizes = [8, 8], strides = [1, 1]} : vector<72x8xbf16> to vector<8x8xbf16>
    %c0_41 = arith.constant 0 : index
    %c4 = arith.constant 4 : index
    %c0_42 = arith.constant 0 : index
    %c0_43 = arith.constant 0 : index
    %48 = vector.load %arg5[%c0_41, %c4, %c0_42, %c0_43] : memref<1x8x8x8xbf16, #tpu.memory_space<vmem>>, vector<1x1x8x8xbf16>
    %49 = vector.shape_cast %48 : vector<1x1x8x8xbf16> to vector<8x8xbf16>
    %50 = vector.shape_cast %47 : vector<8x8xbf16> to vector<1x1x8x8xbf16>
    tpu.vector_store %arg5[%c0_41, %c4, %c0_42, %c0_43], %50 {strides = array<i32>} : memref<1x8x8x8xbf16, #tpu.memory_space<vmem>>, vector<1x1x8x8xbf16>,
    %51 = vector.extract_strided_slice %30 {offsets = [45, 0], sizes = [8, 8], strides = [1, 1]} : vector<72x8xbf16> to vector<8x8xbf16>
    %c0_44 = arith.constant 0 : index
    %c5 = arith.constant 5 : index
    %c0_45 = arith.constant 0 : index
    %c0_46 = arith.constant 0 : index
    %52 = vector.load %arg5[%c0_44, %c5, %c0_45, %c0_46] : memref<1x8x8x8xbf16, #tpu.memory_space<vmem>>, vector<1x1x8x8xbf16>
    %53 = vector.shape_cast %52 : vector<1x1x8x8xbf16> to vector<8x8xbf16>
    %54 = vector.shape_cast %51 : vector<8x8xbf16> to vector<1x1x8x8xbf16>
    tpu.vector_store %arg5[%c0_44, %c5, %c0_45, %c0_46], %54 {strides = array<i32>} : memref<1x8x8x8xbf16, #tpu.memory_space<vmem>>, vector<1x1x8x8xbf16>,
    %55 = vector.extract_strided_slice %30 {offsets = [54, 0], sizes = [8, 8], strides = [1, 1]} : vector<72x8xbf16> to vector<8x8xbf16>
    %c0_47 = arith.constant 0 : index
    %c6 = arith.constant 6 : index
    %c0_48 = arith.constant 0 : index
    %c0_49 = arith.constant 0 : index
    %56 = vector.load %arg5[%c0_47, %c6, %c0_48, %c0_49] : memref<1x8x8x8xbf16, #tpu.memory_space<vmem>>, vector<1x1x8x8xbf16>
    %57 = vector.shape_cast %56 : vector<1x1x8x8xbf16> to vector<8x8xbf16>
    %58 = vector.shape_cast %55 : vector<8x8xbf16> to vector<1x1x8x8xbf16>
    tpu.vector_store %arg5[%c0_47, %c6, %c0_48, %c0_49], %58 {strides = array<i32>} : memref<1x8x8x8xbf16, #tpu.memory_space<vmem>>, vector<1x1x8x8xbf16>,
    %59 = vector.extract_strided_slice %30 {offsets = [63, 0], sizes = [8, 8], strides = [1, 1]} : vector<72x8xbf16> to vector<8x8xbf16>
    %c0_50 = arith.constant 0 : index
    %c7 = arith.constant 7 : index
    %c0_51 = arith.constant 0 : index
    %c0_52 = arith.constant 0 : index
    %60 = vector.load %arg5[%c0_50, %c7, %c0_51, %c0_52] : memref<1x8x8x8xbf16, #tpu.memory_space<vmem>>, vector<1x1x8x8xbf16>
    %61 = vector.shape_cast %60 : vector<1x1x8x8xbf16> to vector<8x8xbf16>
    %62 = vector.shape_cast %59 : vector<8x8xbf16> to vector<1x1x8x8xbf16>
    tpu.vector_store %arg5[%c0_50, %c7, %c0_51, %c0_52], %62 {strides = array<i32>} : memref<1x8x8x8xbf16, #tpu.memory_space<vmem>>, vector<1x1x8x8xbf16>,
    return
  }
  func.func @transform_0(%arg0: i32, %arg1: i32) -> (i32, i32, i32) {
    %c0_i32 = arith.constant 0 : i32
    %c0_i32_0 = arith.constant 0 : i32
    %c0_i32_1 = arith.constant 0 : i32
    return %arg0, %c0_i32, %c0_i32_0 : i32, i32, i32
  }
  func.func @transform_1(%arg0: i32, %arg1: i32) -> (i32, i32, i32) {
    %c0_i32 = arith.constant 0 : i32
    %c0_i32_0 = arith.constant 0 : i32
    %c0_i32_1 = arith.constant 0 : i32
    return %c0_i32, %c0_i32_0, %arg1 : i32, i32, i32
  }
  func.func @transform_2(%arg0: i32, %arg1: i32) -> (i32, i32) {
    %c0_i32 = arith.constant 0 : i32
    %c0_i32_0 = arith.constant 0 : i32
    return %c0_i32, %arg1 : i32, i32
  }
  func.func @transform_3(%arg0: i32, %arg1: i32) -> (i32, i32, i32, i32) {
    %c0_i32 = arith.constant 0 : i32
    %c0_i32_0 = arith.constant 0 : i32
    %c0_i32_1 = arith.constant 0 : i32
    return %arg0, %c0_i32, %c0_i32_0, %arg1 : i32, i32, i32, i32
  }
}

</mosaic_0001>

<bundles_post_ra>
// kernel: tpu_custom_call.1
= control target key start
LH: loop header
LB: loop body
LE: loop exit
PB: predicated region body
PF: predicated region fallthrough
CT: control target
= control target key end

     0   :  { %8 = vsyncpa [#allocation3], 0  ;;  %s1363_s0 = inlined_call_operand.vmem [shape: bf16[2,90,16], index: 0, kind: input, shape index: {}]   ;;  %s1364_s1 = inlined_call_operand.vmem [shape: bf16[4,16,8], index: 1, kind: input, shape index: {}]   ;;  %s1365_s2 = inlined_call_operand.vmem [shape: f32[1,8], index: 2, kind: input, shape index: {}]   ;;  %s1366_s3 = inlined_call_operand.hbm [shape: bf16[2,8,8,8], index: 3, kind: output, shape index: {}]  }
   0x1   :  { %10 = vsyncpa [#allocation3 + $0x1], 0  ;;  %s1169_s12 = smov 0   ;;  %s1171_s13 = smov 0  }
   0x2   :  { %s1173_s14 = smov 0   ;;  %s1175_s15 = smov 0  }
   0x3   :  { %s1177_s16 = smov 0   ;;  %s1179_s17 = smov 0  }
   0x4 LB: > { %s893_s18 = sadd.s32 4294967295, %s1145_s17   ;;  %s894_s19 = sadd.s32 4294967294, %s1145_s17   ;;  %s1145_s17 = sphi %s1179_s17, %s16_s17   ;;  %s1141_s16 = sphi %s1177_s16, %s1373_s16   ;;  %s1137_s15 = sphi %s1175_s15, %s1372_s15   ;;  %s1133_s14 = sphi %s1173_s14, %s1371_s14   ;;  %s1129_s13 = sphi %s1171_s13, %s1370_s13   ;;  %s1125_s12 = sphi %s1169_s12, %s1369_s12  }
   0x5   : > { %s28_s20 = sadd.s32 1, %s1141_s16  ;;  %s115_s21 = sadd.s32 1, %s1133_s14 }
   0x6   : > { %p30_p0 = scmp.ge.s32.totalorder %s28_s20, 2  ;;  %p125_p1 = scmp.ne.s32.totalorder %s1133_s14, %s1129_s13 }
   0x7   : > { %p126_p2 = scmp.eq.s32.totalorder %s893_s18, 1  ;;  %p131_p3 = scmp.ne.s32.totalorder %s1129_s13, %s1125_s12 }
   0x8   : > { %s1375_s20 = smov (%p30_p0, %s28_s20), 0  ;;  %p132_p5 = scmp.eq.s32.totalorder %s894_s19, 1 }
   0x9   : > { %p1209_p4 = por %p126_p2, %p125_p1  ;;  %s110_s23 = ssub.s32 %s1141_s16, %s1375_s20 }
   0xa   : > { %p899_p6 = scmp.ge.s32.totalorder %s1145_s17, 1  ;;  %p113_p7 = scmp.eq.s32.totalorder %s110_s23, 0 }
   0xb   : > { %p1216_p8 = por %p132_p5, %p131_p3  ;;  %p171_p9 = scmp.lt.s32.totalorder %s1145_s17, 3 }
   0xc   : > { %s1222_s25 = scalar_select %p113_p7, %s1133_s14, %s115_s21  }
   0xd   : > { %p172_p10 = pnand %p899_p6, %p171_p9 }
   0xe   : > { %p202_p11 = scmp.lt.s32.totalorder (!%p172_p10), %s1137_s15, 1  ;;  %s199_s21 = sand.u32 (!%p172_p10), 1, %s1129_s13  }
   0xf   : > { %175 = sbr.rel (%p172_p10) target bundleno = 251 (0xfb), region = 32  ;;  %s900_s23 = sshll.u32 (!%p172_p10), %s199_s21, 5 }
  0x10   : > { %s1298_s26 = scalar_lea.vmem (!%p172_p10), [#allocation2], %s900_s23  ;;  %s1004_s27 = sshll.u32 (!%p172_p10), %s1137_s15, 5 }
  0x11   : > { %s790_s30 = scalar_lea.hbm (!%p172_p10), %s1366_s3, %s1004_s27  ;;  %s791_s4 = sshll.u32 (!%p172_p10), %s1298_s26, 4  ;;  %s792_s4 = int_to_ptr.vmem [resolvable:$true] %s791_s4 }
  0x12   : > { %s793_s5 = sshll.u32 (!%p172_p10), %s790_s30, 4  ;;  %s1087_s10 = scalar_lea.hbm (!%p172_p10), %s1366_s3, 64  ;;  %s794_s5 = int_to_ptr.hbm [resolvable:$true] %s793_s5 }
  0x13   : > { %s1081_s6 = sshra.s32 (!%p172_p10), %s794_s5, 4  ;;  %s1082_s6 = int_to_ptr.hbm [resolvable:$true] %s1081_s6 }
  0x14   : > { %v996_v0 = vld [vmem:[%s1364_s1] sm:$0xff]  ;;  %v1003_v1 = vld [vmem:[%s1364_s1 + $0x18] sm:$0xff]  ;;  %v997_v2 = vld [vmem:[%s1364_s1 + $0x8] sm:$0xff]  ;;  %s203_s7 = scalar_select %p202_p11, %s1137_s15, 1  ;;  %vm301_vm0 = vcmask 130048   ;;  %vm548_vm1 = vcmask 1046528  }
  0x15   : > { %v1002_v3 = vld [vmem:[%s1364_s1 + $0x10] sm:$0xff]  ;;  %375 = vmatpush.bf16.msra.mxu1 %v996_v0  ;;  %586 = vmatpush.bf16.msra.mxu3 %v1003_v1  ;;  %vm255_vm2 = vsmask.f32 7424  ;;  %vm652_vm3 = vcmask 60416   ;;  %vm654_vm4 = vsmask.f32 3328  ;;  %p1088_p1 = scmp.lt.s32.totalorder %s1082_s6, %s1366_s3 }
  0x16   : > { %324 = vmatpush.bf16.msra.mxu0 %v997_v2  ;;  %506 = vmatpush.bf16.msra.mxu2 %v1002_v3  ;;  %s1005_s8 = smul.u32 48, %s203_s7  ;;  %vm655_vm5 = vsmask.f32 7440  ;;  %vm676_vm7 = vcmask 1042432   ;;  %vm677_vm8 = vcmask 1046532   ;;  %vm712_vm13 = vcmask 1041408  }
  0x17   : > { %vm656_vm6 = vmor %vm654_vm4, %vm655_vm5  ;;  %vm686_vm10 = vsmask.f32 2304  ;;  %vm687_vm11 = vsmask.f32 6416  ;;  %vm713_vm14 = vcmask 1045508   ;;  %vm748_vm4 = vcmask 1040384  }
  0x18   : > { %s1241_s11 = scalar_lea.vmem %s1363_s0, %s1005_s8  ;;  %vm678_vm9 = vmor %vm676_vm7, %vm677_vm8  ;;  %vm749_vm5 = vcmask 1044484   ;;  %vm758_vm7 = vsmask.f32 256  ;;  %vm759_vm8 = vsmask.f32 4368  ;;  %s778_s15 = scalar_lea.sflag [#allocation3], %s199_s21 }
  0x19   : > { %v992_v4 = vld [vmem:[%s1241_s11] sm:$0xff]  ;;  %v1064_v6 = vld [vmem:[%s1241_s11 + $0x4] sm:$0xf0]  ;;  %v998_v7 = vld [vmem:[%s1241_s11 + $0xc] sm:$0xff]  ;;  %s1083_s7 = scalar_lea.hbm %s1082_s6, 32 }
  0x1a   : > { %v402_v5 = vld [vmem:[%s1241_s11 + $0x4] sm:$0xff]   ;;  %v259_v10 = vshll.u32 %v992_v4, 16  ;;  %933 = vmatmul.msk.bf16.vlgmr.msra.gmra.mxu1 %vm301_vm0, %v992_v4  ;;  %v257_v11 = vshrl.u32 %v992_v4, 16  ;;  %v447_v13 = vshll.u32 %v998_v7, 16  ;;  %v550_v15 = vrot.slane %v998_v7, 1  ;;  %v994_v27 = vld [vmem:[%s1241_s11 + $0x10] sm:$0xff]  ;;  %vm688_vm12 = vmor %vm686_vm10, %vm687_vm11  ;;  %p1084_p12 = scmp.ne.s32.totalorder %s1082_s6, %s1083_s7  ;;  %p1089_p2 = scmp.lt.s32.totalorder %s1087_s10, %s1083_s7 }
  0x1b   : > { %v1065_v8 = vld [vmem:[%s1241_s11 + $0x4] sm:$0xe]  ;;  %v993_v9 = vld [vmem:[%s1241_s11 + $0x8] sm:$0xff]  ;;  %v440_v18 = vshrl.u32 %v402_v5, 16  ;;  %v442_v19 = vshll.u32 %v402_v5, 16  ;;  %v999_v29 = vld [vmem:[%s1241_s11 + $0x14] sm:$0xff] }
  0x1c   : > { %v264_v12 = vshll.u32 %v993_v9, 16  ;;  %v1066_v14 = vor.u32 %v1065_v8, %v1064_v6  ;;  %v261_v16 = vrot.slane %v259_v10, 1  ;;  %v449_v23 = vrot.slane %v447_v13, 1  ;;  %v995_v42 = vld [vmem:[%s1241_s11 + $0x18] sm:$0xff]  ;;  %v223_v51 = vld [vmem:[%s1241_s11 + $0x20] sm:$0xf]  ;;  %vm714_vm15 = vmor %vm712_vm13, %vm713_vm14  ;;  %p1085_p13 = pnand %p1084_p12, %p1209_p4  ;;  %p1090_p3 = por %p1089_p2, %p1088_p1 }
  0x1d   : > { %v444_v22 = vrot.slane %v442_v19, 1  ;;  %v268_v30 = vshrl.u32 %v993_v9, 16  ;;  %v272_v31 = vshll.u32 %v994_v27, 16  ;;  %v451_v32 = vshrl.u32 %v998_v7, 16  ;;  %v1000_v43 = vld [vmem:[%s1241_s11 + $0x1c] sm:$0xff] }
  0x1e   : > { %v266_v17 = vrot.slane %v264_v12, 1  ;;  %v549_v20 = vrot.slane %v1066_v14, 1  ;;  %v262_v21 = vor.u32 %v261_v16, %v257_v11  ;;  %v455_v33 = vshll.u32 %v999_v29, 16  ;;  %v226_v52 = vld [vmem:[%s1241_s11 + $0x24] sm:$0x1]  ;;  %p1086_p0 = pneg %p1085_p13 }
  0x1f   : > { %v445_v26 = vor.u32 %v444_v22, %v440_v18  ;;  %v552_v34 = vrot.slane %v999_v29, 1  ;;  %v274_v36 = vrot.slane %v272_v31, 1  ;;  %v453_v37 = vor.u32 %v451_v32, %v449_v23  ;;  %v954_v61 = vld [vmem:[%s1241_s11 + $0x24] sm:$0xf]  ;;  %v1001_v62 = vld [vmem:[%s1241_s11 + $0x24] sm:$0x10] }
  0x20   : > { %v551_v24 = vsel %vm548_vm1, %v549_v20, %v550_v15  ;;  %v267_v25 = vsel %vm255_vm2, %v262_v21, %v266_v17  ;;  %v270_v35 = vor.u32 %v268_v30, %v266_v17  ;;  %v457_v38 = vrot.slane %v455_v33, 1  ;;  %p1091_p5 = pnand %p1090_p3, %p1086_p0 }
  0x21   : > { %971 = vmatmul.msk.bf16.vlgmr.msra.gmra.mxu3 %vm301_vm0, %v551_v24  ;;  %924 = vmatmul.msk.bf16.vlgmr.msra.gmra.mxu0 %vm301_vm0, %v267_v25  ;;  %v450_v28 = vsel %vm255_vm2, %v445_v26, %v449_v23  ;;  %v553_v39 = vsel %vm548_vm1, %v550_v15, %v552_v34  ;;  %v276_v44 = vshrl.u32 %v994_v27, 16  ;;  %v280_v45 = vshll.u32 %v995_v42, 16  ;;  %v1292_v26 = vld [vmem:[%s1365_s2] ss:$0 sm:$0xff] }
  0x22   : > { %960 = vmatmul.msk.bf16.vlgmr.msra.gmra.mxu2 %vm301_vm0, %v450_v28  ;;  %v275_v40 = vsel %vm255_vm2, %v270_v35, %v274_v36  ;;  %v458_v41 = vsel %vm255_vm2, %v453_v37, %v457_v38  ;;  %v459_v46 = vshrl.u32 %v999_v29, 16  ;;  %v463_v47 = vshll.u32 %v1000_v43, 16 }
  0x23   : > { %v554_v48 = vrot.slane %v1000_v43, 1  ;;  %v278_v49 = vor.u32 %v276_v44, %v274_v36  ;;  %v282_v50 = vrot.slane %v280_v45, 1  ;;  %v248_v57 = vunpack.c.l.b16 %v223_v51 }
  0x24   : > { %v461_v53 = vor.u32 %v459_v46, %v457_v38  ;;  %v465_v54 = vrot.slane %v463_v47, 1  ;;  %v249_v58 = vunpack.c.l.b16 %v226_v52  ;;  %v955_v63 = vor.u32 %v1001_v62, %v954_v61 }
  0x25   : > { %v555_v55 = vsel %vm548_vm1, %v552_v34, %v554_v48  ;;  %v283_v56 = vsel %vm255_vm2, %v278_v49, %v282_v50  ;;  %v284_v0 = vshrl.u32 %v995_v42, 16  ;;  %v467_v2 = vshrl.u32 %v1000_v43, 16 }
  0x26   : > { %v466_v59 = vsel %vm255_vm2, %v461_v53, %v465_v54  ;;  %v254_v60 = vpack.c.b16 %v249_v58, %v248_v57  ;;  %v471_v3 = vshll.u32 %v955_v63, 16  ;;  %v556_v4 = vrot.slane %v955_v63, 1 }
  0x27   : > { %v286_v5 = vor.u32 %v284_v0, %v282_v50  ;;  %v469_v7 = vor.u32 %v467_v2, %v465_v54  ;;  %v350_v12 = vpack.c.b16 %v248_v57, %v248_v57  ;;  %v475_v14 = vshrl.u32 %v955_v63, 16 }
  0x28   : > { %v288_v1 = vshll.u32 %v254_v60, 16  ;;  %v473_v8 = vrot.slane %v471_v3, 1  ;;  %v292_v13 = vshrl.u32 %v254_v60, 16 }
  0x2a   : > { %934 = vmatmul.msk.bf16.gmra.mxu1 %vm301_vm0, %v993_v9  ;;  %v290_v6 = vrot.slane %v288_v1, 1  ;;  %v557_v9 = vsel %vm548_vm1, %v554_v48, %v556_v4  ;;  %v474_v11 = vsel %vm255_vm2, %v469_v7, %v473_v8  ;;  %v477_v16 = vor.u32 %v475_v14, %v473_v8 }
  0x2b   : > { %vm723_vm1 = vsmask.f32 5392 }
  0x2c   : > { %v291_v10 = vsel %vm255_vm2, %v286_v5, %v290_v6  ;;  %v294_v15 = vor.u32 %v292_v13, %v290_v6 }
  0x31   : > { %972 = vmatmul.msk.bf16.gmra.mxu3 %vm301_vm0, %v553_v39  ;;  %925 = vmatmul.msk.bf16.gmra.mxu0 %vm301_vm0, %v275_v40 }
  0x32   : > { %961 = vmatmul.msk.bf16.gmra.mxu2 %vm301_vm0, %v458_v41 }
  0x3a   : > { %935 = vmatmul.msk.bf16.gmra.mxu1 %vm301_vm0, %v994_v27 }
  0x41   : > { %973 = vmatmul.msk.bf16.gmra.mxu3 %vm301_vm0, %v555_v55  ;;  %926 = vmatmul.msk.bf16.gmra.mxu0 %vm301_vm0, %v283_v56 }
  0x42   : > { %962 = vmatmul.msk.bf16.gmra.mxu2 %vm301_vm0, %v466_v59 }
  0x4a   : > { %936 = vmatmul.msk.bf16.gmra.mxu1 %vm301_vm0, %v995_v42 }
  0x51   : > { %974 = vmatmul.msk.bf16.gmra.mxu3 %vm301_vm0, %v557_v9  ;;  %927 = vmatmul.msk.bf16.gmra.mxu0 %vm301_vm0, %v291_v10 }
  0x52   : > { %963 = vmatmul.msk.bf16.gmra.mxu2 %vm301_vm0, %v474_v11 }
  0x5a   : > { %937 = vmatmul.msk.bf16.gmra.mxu1 %vm301_vm0, %v350_v12 }
  0x61   : > { %975 = vmatmul.msk.bf16.gmra.mxu3 %vm301_vm0, %v556_v4  ;;  %928 = vmatmul.msk.bf16.gmra.mxu0 %vm301_vm0, %v294_v15 }
  0x62   : > { %964 = vmatmul.msk.bf16.gmra.mxu2 %vm301_vm0, %v477_v16  ;;  %vm722_vm0 = vsmask.f32 1280 }
  0x63   : > { %vm724_vm2 = vmor %vm722_vm0, %vm723_vm1 }
  0x97   : > { %v377_v17 = vpop.f32.mrf.mxu1 }
  0x9e   : > { %v326_v18 = vpop.f32.mrf.mxu0 }
  0x9f   : > { %v379_v19 = vpop.f32.mrf.mxu1  ;;  %v378_v20 = vadd.f32 %v377_v17, %v326_v18 }
  0xa4   : > { %v588_v21 = vpop.f32.mrf.mxu3 }
  0xa5   : > { %v508_v23 = vpop.f32.mrf.mxu2 }
  0xa6   : > { %v328_v22 = vpop.f32.mrf.mxu0  ;;  %v532_v25 = vadd.f32 %v508_v23, %v378_v20 }
  0xa7   : > { %v382_v24 = vpop.f32.mrf.mxu1  ;;  %v380_v30 = vadd.f32 %v379_v19, %v328_v22 }
  0xa8   : > { %v612_v27 = vadd.f32 %v588_v21, %v532_v25 }
  0xaa   : > { %v625_v28 = vadd.f32 %v1292_v26, %v612_v27 }
  0xac   : > { %v590_v29 = vpop.f32.mrf.mxu3  ;;  %v634_v31 = vmax.f32 %v625_v28, 0.0 }
  0xad   : > { %v510_v33 = vpop.f32.mrf.mxu2 }
  0xae   : > { %v331_v32 = vpop.f32.mrf.mxu0  ;;  %v643_v35 = vpack.c.bf16 %v634_v31, %v634_v31  ;;  %v533_v36 = vadd.f32 %v510_v33, %v380_v30 }
  0xaf   : > { %v384_v34 = vpop.f32.mrf.mxu1  ;;  %v383_v38 = vadd.f32 %v382_v24, %v331_v32 }
  0xb0   : > { %653 = vst.msk [vmem:[%s1298_s26] sm:$0xf] %vm652_vm3, %v643_v35  ;;  %v613_v37 = vadd.f32 %v590_v29, %v533_v36 }
  0xb2   : > { %v626_v39 = vadd.f32 %v1292_v26, %v613_v37 }
  0xb4   : > { %v593_v40 = vpop.f32.mrf.mxu3  ;;  %v635_v41 = vmax.f32 %v626_v39, 0.0 }
  0xb5   : > { %v513_v43 = vpop.f32.mrf.mxu2 }
  0xb6   : > { %v333_v42 = vpop.f32.mrf.mxu0  ;;  %v644_v45 = vpack.c.bf16 %v635_v41, %v635_v41  ;;  %v534_v46 = vadd.f32 %v513_v43, %v383_v38 }
  0xb7   : > { %v387_v44 = vpop.f32.mrf.mxu1  ;;  %v385_v54 = vadd.f32 %v384_v34, %v333_v42 }
  0xb8   : > { %v658_v47 = vshrl.u32 %v644_v45, 16  ;;  %v661_v48 = vshll.u32 %v644_v45, 16  ;;  %v614_v49 = vadd.f32 %v593_v40, %v534_v46 }
  0xba   : > { %v660_v50 = vrot.slane %v658_v47, 4  ;;  %v663_v51 = vrot.slane %v661_v48, 5  ;;  %v627_v52 = vadd.f32 %v1292_v26, %v614_v49 }
  0xbc   : > { %v595_v53 = vpop.f32.mrf.mxu3  ;;  %v636_v55 = vmax.f32 %v627_v52, 0.0  ;;  %v664_v59 = vor.u32 %v663_v51, %v660_v50 }
  0xbd   : > { %v515_v57 = vpop.f32.mrf.mxu2 }
  0xbe   : > { %v336_v56 = vpop.f32.mrf.mxu0  ;;  %v645_v60 = vpack.c.bf16 %v636_v55, %v636_v55  ;;  %v535_v61 = vadd.f32 %v515_v57, %v385_v54  ;;  %v665_v0 = vrot.slane %v664_v59, 4 }
  0xbf   : > { %v389_v58 = vpop.f32.mrf.mxu1  ;;  %v388_v2 = vadd.f32 %v387_v44, %v336_v56 }
  0xc0   : > { %v667_v62 = vshll.u32 %v645_v60, 16  ;;  %v615_v63 = vadd.f32 %v595_v53, %v535_v61  ;;  %v977_v12 = vrot.slane %v645_v60, 9 }
  0xc2   : > { %v669_v1 = vrot.slane %v667_v62, 5  ;;  %v628_v3 = vadd.f32 %v1292_v26, %v615_v63 }
  0xc4   : > { %v598_v4 = vpop.f32.mrf.mxu3  ;;  %v670_v5 = vsel %vm656_vm6, %v665_v0, %v669_v1  ;;  %v637_v6 = vmax.f32 %v628_v3, 0.0  ;;  %vm750_vm6 = vmor %vm748_vm4, %vm749_vm5 }
  0xc5   : > { %976 = vst.msk [vmem:[%s1298_s26 + $0x4] sm:$0xf] %vm652_vm3, %v670_v5  ;;  %v518_v8 = vpop.f32.mrf.mxu2 }
  0xc6   : > { %v338_v7 = vpop.f32.mrf.mxu0  ;;  %v646_v10 = vpack.c.bf16 %v637_v6, %v637_v6  ;;  %v536_v11 = vadd.f32 %v518_v8, %v388_v2 }
  0xc7   : > { %v392_v9 = vpop.f32.mrf.mxu1  ;;  %v390_v22 = vadd.f32 %v389_v58, %v338_v7 }
  0xc8   : > { %v681_v13 = vrot.slane %v646_v10, 5  ;;  %v690_v14 = vshrl.u32 %v646_v10, 16  ;;  %v693_v15 = vshll.u32 %v646_v10, 16  ;;  %v616_v16 = vadd.f32 %v598_v4, %v536_v11 }
  0xca   : > { %v682_v17 = vsel %vm678_vm9, %v977_v12, %v681_v13  ;;  %v629_v18 = vadd.f32 %v1292_v26, %v616_v16  ;;  %v692_v20 = vrot.slane %v690_v14, 5  ;;  %v695_v21 = vrot.slane %v693_v15, 6  ;;  %vm760_vm9 = vmor %vm758_vm7, %vm759_vm8 }
  0xcb   : > { %978 = vst.msk [vmem:[%s1298_s26 + $0x8] sm:$0xf] %vm652_vm3, %v682_v17 }
  0xcc   : > { %v600_v19 = vpop.f32.mrf.mxu3  ;;  %v638_v23 = vmax.f32 %v629_v18, 0.0  ;;  %v696_v30 = vor.u32 %v695_v21, %v692_v20 }
  0xcd   : > { %v520_v25 = vpop.f32.mrf.mxu2 }
  0xce   : > { %v341_v24 = vpop.f32.mrf.mxu0  ;;  %v647_v28 = vpack.c.bf16 %v638_v23, %v638_v23  ;;  %v537_v29 = vadd.f32 %v520_v25, %v390_v22  ;;  %v697_v39 = vrot.slane %v696_v30, 4 }
  0xcf   : > { %v394_v27 = vpop.f32.mrf.mxu1  ;;  %v393_v36 = vadd.f32 %v392_v9, %v341_v24 }
  0xd0   : > { %v699_v31 = vshrl.u32 %v647_v28, 16  ;;  %v702_v32 = vshll.u32 %v647_v28, 16  ;;  %v617_v33 = vadd.f32 %v600_v19, %v537_v29  ;;  %v980_v48 = vrot.slane %v647_v28, 10 }
  0xd2   : > { %v701_v34 = vrot.slane %v699_v31, 5  ;;  %v704_v35 = vrot.slane %v702_v32, 6  ;;  %v630_v37 = vadd.f32 %v1292_v26, %v617_v33 }
  0xd4   : > { %v603_v38 = vpop.f32.mrf.mxu3  ;;  %v705_v40 = vor.u32 %v704_v35, %v701_v34  ;;  %v639_v41 = vmax.f32 %v630_v37, 0.0 }
  0xd5   : > { %v523_v43 = vpop.f32.mrf.mxu2 }
  0xd6   : > { %v343_v42 = vpop.f32.mrf.mxu0  ;;  %v706_v45 = vsel %vm688_vm12, %v697_v39, %v705_v40  ;;  %v648_v46 = vpack.c.bf16 %v639_v41, %v639_v41  ;;  %v538_v47 = vadd.f32 %v523_v43, %v393_v36 }
  0xd7   : > { %v397_v44 = vpop.f32.mrf.mxu1  ;;  %979 = vst.msk [vmem:[%s1298_s26 + $0xc] sm:$0xf] %vm652_vm3, %v706_v45  ;;  %v395_v58 = vadd.f32 %v394_v27, %v343_v42 }
  0xd8   : > { %v717_v49 = vrot.slane %v648_v46, 6  ;;  %v726_v50 = vshrl.u32 %v648_v46, 16  ;;  %v729_v51 = vshll.u32 %v648_v46, 16  ;;  %v618_v52 = vadd.f32 %v603_v38, %v538_v47 }
  0xda   : > { %v718_v53 = vsel %vm714_vm15, %v980_v48, %v717_v49  ;;  %v631_v54 = vadd.f32 %v1292_v26, %v618_v52  ;;  %v728_v56 = vrot.slane %v726_v50, 6  ;;  %v731_v57 = vrot.slane %v729_v51, 7 }
  0xdb   : > { %981 = vst.msk [vmem:[%s1298_s26 + $0x10] sm:$0xf] %vm652_vm3, %v718_v53 }
  0xdc   : > { %v605_v55 = vpop.f32.mrf.mxu3  ;;  %v640_v59 = vmax.f32 %v631_v54, 0.0  ;;  %v732_v1 = vor.u32 %v731_v57, %v728_v56 }
  0xdd   : > { %v525_v61 = vpop.f32.mrf.mxu2 }
  0xde   : > { %v346_v60 = vpop.f32.mrf.mxu0  ;;  %v649_v63 = vpack.c.bf16 %v640_v59, %v640_v59  ;;  %v539_v0 = vadd.f32 %v525_v61, %v395_v58  ;;  %v733_v10 = vrot.slane %v732_v1, 4 }
  0xdf   : > { %v399_v62 = vpop.f32.mrf.mxu1  ;;  %v398_v7 = vadd.f32 %v397_v44, %v346_v60 }
  0xe0   : > { %v735_v2 = vshrl.u32 %v649_v63, 16  ;;  %v738_v3 = vshll.u32 %v649_v63, 16  ;;  %v619_v4 = vadd.f32 %v605_v55, %v539_v0  ;;  %v983_v18 = vrot.slane %v649_v63, 11 }
  0xe2   : > { %v737_v5 = vrot.slane %v735_v2, 6  ;;  %v740_v6 = vrot.slane %v738_v3, 7  ;;  %v632_v8 = vadd.f32 %v1292_v26, %v619_v4 }
  0xe4   : > { %v608_v9 = vpop.f32.mrf.mxu3  ;;  %v741_v11 = vor.u32 %v740_v6, %v737_v5  ;;  %v641_v12 = vmax.f32 %v632_v8, 0.0 }
  0xe5   : > { %v528_v14 = vpop.f32.mrf.mxu2 }
  0xe6   : > { %v348_v13 = vpop.f32.mrf.mxu0  ;;  %v742_v15 = vsel %vm724_vm2, %v733_v10, %v741_v11  ;;  %v650_v16 = vpack.c.bf16 %v641_v12, %v641_v12  ;;  %v540_v17 = vadd.f32 %v528_v14, %v398_v7 }
  0xe7   : > { %982 = vst.msk [vmem:[%s1298_s26 + $0x14] sm:$0xf] %vm652_vm3, %v742_v15 }
  0xe8   : > { %v753_v19 = vrot.slane %v650_v16, 7  ;;  %v620_v20 = vadd.f32 %v608_v9, %v540_v17  ;;  %v762_v28 = vshrl.u32 %v650_v16, 16 }
  0xea   : > { %v754_v21 = vsel %vm750_vm6, %v983_v18, %v753_v19  ;;  %v633_v22 = vadd.f32 %v1292_v26, %v620_v20  ;;  %v985_v31 = vrot.slane %v762_v28, 11 }
  0xeb   : > { %984 = vst.msk [vmem:[%s1298_s26 + $0x18] sm:$0xf] %vm652_vm3, %v754_v21 }
  0xec   : > { %v610_v23 = vpop.f32.mrf.mxu3  ;;  %v642_v24 = vmax.f32 %v633_v22, 0.0 }
  0xed   : > { %v530_v25 = vpop.f32.mrf.mxu2 }
  0xee   : > { %v651_v27 = vpack.c.bf16 %v642_v24, %v642_v24 }
  0xf0   : > { %v767_v29 = vshrl.u32 %v651_v27, 16  ;;  %v770_v30 = vshll.u32 %v651_v27, 16 }
  0xf2   : > { %v769_v26 = vrot.slane %v767_v29, 7 }
  0xf4   : > { %v772_v32 = vor.u32 %v770_v30, %v769_v26 }
  0xf6   : > { %v773_v33 = vsel %vm760_vm9, %v985_v31, %v772_v32 }
  0xf7   : > { %986 = vst.msk [vmem:[%s1298_s26 + $0x1c] sm:$0xf] %vm652_vm3, %v773_v33 }
  0xf8   : > { %1094 = shalt.err (!%p1091_p5)
}
  0xf9   : > { %s1147_s19 = smov 64   ;;  %s1148_s21 = smov 4  }
  0xfa   : > { %1006 = dma.vmem_to_hbm [thread:$0]  (%p1209_p4), %s792_s4, 512, %s794_s5, %s778_s15, %s1147_s19, %s1147_s19, %s1148_s21  }
  0xfb PF: > { %p1012_p6 = scmp.ge.s32.totalorder %s1145_s17, 2  ;;  %s808_s23 = sand.u32 1, %s1125_s12  }
  0xfc   : > { %s809_s26 = scalar_lea.sflag [#allocation3], %s808_s23 }
  0xfd   : > { %p1009_p7 = pnand %p1012_p6, %p1216_p8 }
  0xff   : > { %p1010_p9 = pneg %p1009_p7 }
 0x101   : > { %1120 = dma.done.wait (%p1010_p9), %s809_s26, 512  }
 0x102   : > { %1122 = vsyncadd (%p1010_p9), %s809_s26, 4294966784  ;;  %s16_s17 = sadd.s32 1, %s1145_s17   ;;  %s1369_s12 = smov %s1129_s13 }
 0x103   : > { %p13_p10 = scmp.ge.s32.totalorder %s16_s17, 4   ;;  %s1370_s13 = smov %s1133_s14 }
 0x104   : > { %s1371_s14 = smov %s1222_s25  ;;  %s1372_s15 = smov %s1141_s16 }
 0x105   : > { %s1373_s16 = smov %s1375_s20  ;;  %15 = sbr.rel (!%p13_p10) target bundleno = 4 (0x4), region = 83 }
 0x10a   :  { %815 = vsyncpa [#allocation3], 1 }
 0x10b   :  { %817 = vsyncpa [#allocation3 + $0x1], 1 }

</bundles_post_ra>
